<compile_context>
chip_gen: v6e
topology: v6e:2x2x1
jax: 0.10.0
libtpu: 0.0.40
codegen_flags: <defaults>
</compile_context>

<pallas_src>
import math

import jax
import jax.numpy as jnp
from jax.experimental import pallas as pl
from jax.experimental.pallas import tpu as pltpu

# ----------------------------- model sizes (synthetic BFM) ------------------------
N_VERT = 256          # number of mesh vertices (real BFM: 35709)
N_FACE = 304          # number of triangles
N_MASK_VERT = 128     # "front mask" vertex subset
N_MASK_FACE = 160
N_ID, N_EX, N_TEX = 80, 64, 80
N_KP = 68
COEFF_DIM = 257       # 80 id + 64 ex + 80 tex + 3 angles + 27 gamma + 3 translation

VERT_TILE_TARGET = 8192   # lane tile for the fused formation kernel (mult of 128)
ILLUM_TILE_MAX = 32768    # cap for the illumination lane tile (mult of 128)


def _round_up(x, m):
    return ((x + m - 1) // m) * m


def _pick_tile(extent, target):
    """Largest multiple-of-128 tile <= target, clamped to the padded extent."""
    e128 = _round_up(extent, 128)
    return min(target, e128)


def _pick_tile_two_steps(extent, max_tile):
    """Multiple-of-128 tile that yields ~2 grid steps (v7x megacore), capped."""
    e128 = _round_up(extent, 128)
    if e128 <= 128:
        return e128
    half = _round_up((e128 + 1) // 2, 128)
    return min(half, max_tile)


# =============================== Pallas kernels ===================================
def _formation_kernel(coef_se_ref, coef_tex_ref, basis_se_ref, basis_tex_ref,
                      mean_shape_ref, mean_tex_ref, shape_out_ref, tex_out_ref):
    """Fused shape + texture formation for one lane tile of the 3*n_vert axis.

    shape = [id|ex]_coeff @ [idBase|exBase].T + (meanshape - mean_center)
    tex   = tex_coeff @ texBase.T + meantex
    Bases are bf16 (pre-tiled contiguously), accumulation f32.
    """
    shape_out_ref[...] = (
        jnp.dot(coef_se_ref[...], basis_se_ref[...],
                preferred_element_type=jnp.float32)
        + mean_shape_ref[...]
    )
    tex_out_ref[...] = (
        jnp.dot(coef_tex_ref[...], basis_tex_ref[...],
                preferred_element_type=jnp.float32)
        + mean_tex_ref[...]
    )


def _illumination_kernel(norm_ref, tex_ref, gamma_ref, out_ref):
    """Spherical-harmonics shading on one (B, 3, tile) channel-major lane tile.

    SH contraction is done as 9 broadcast-MAC terms on the VPU into one
    (B, 3, Nt) accumulator; single full-block lane-dense store.
    """
    norm = norm_ref[...]      # (B, 3, Nt)
    tex = tex_ref[...]        # (B, 3, Nt)
    gamma = gamma_ref[...]    # (B, 3, 9)   init_lit already added by glue

    pi = math.pi
    a0 = pi
    a1 = 2.0 * pi / math.sqrt(3.0)
    a2 = 2.0 * pi / math.sqrt(8.0)
    c0 = 1.0 / math.sqrt(4.0 * pi)
    c1 = math.sqrt(3.0) / math.sqrt(4.0 * pi)
    c2 = 3.0 * math.sqrt(5.0) / math.sqrt(12.0 * pi)

    nx = norm[:, 0:1, :]      # (B, 1, Nt)
    ny = norm[:, 1:2, :]
    nz = norm[:, 2:3, :]

    shade = (
        gamma[:, :, 0:1] * (a0 * c0)
        + gamma[:, :, 1:2] * ((-a1 * c1) * ny)
        + gamma[:, :, 2:3] * ((a1 * c1) * nz)
        + gamma[:, :, 3:4] * ((-a1 * c1) * nx)
        + gamma[:, :, 4:5] * ((a2 * c2) * (nx * ny))
        + gamma[:, :, 5:6] * ((-a2 * c2) * (ny * nz))
        + gamma[:, :, 6:7] * ((a2 * c2 * 0.5 / math.sqrt(3.0)) * (3.0 * nz * nz - 1.0))
        + gamma[:, :, 7:8] * ((-a2 * c2) * (nx * nz))
        + gamma[:, :, 8:9] * ((a2 * c2 * 0.5) * (nx * nx - ny * ny))
    )                          # (B, 3, Nt)
    out_ref[...] = shade * tex


# =============================== kernel wrappers ===================================
def formation_pallas(id_coeff, ex_coeff, tex_coeff, fm):
    """Returns (face_shape_flat, face_texture_flat), both (B, M_pad) f32."""
    B = id_coeff.shape[0]
    basis_se_t = fm["basis_se_t"]     # (n_blk, N_ID+N_EX, tile) bf16, contiguous per block
    basis_tex_t = fm["basis_tex_t"]   # (n_blk, N_TEX, tile) bf16
    tile = fm["vert_tile"]
    n_blk = basis_se_t.shape[0]
    M_pad = n_blk * tile

    coef_se = jnp.concatenate([id_coeff, ex_coeff], axis=1).astype(jnp.bfloat16)
    coef_tex = tex_coeff.astype(jnp.bfloat16)
    n_se = coef_se.shape[1]
    n_tex = coef_tex.shape[1]

    return pl.pallas_call(
        _formation_kernel,
        out_shape=(jax.ShapeDtypeStruct((B, M_pad), jnp.float32),
                   jax.ShapeDtypeStruct((B, M_pad), jnp.float32)),
        grid_spec=pltpu.PrefetchScalarGridSpec(
            num_scalar_prefetch=0,
            grid=(n_blk,),
            in_specs=[
                pl.BlockSpec((B, n_se), lambda j: (0, 0)),
                pl.BlockSpec((B, n_tex), lambda j: (0, 0)),
                # pre-tiled bases: one contiguous HBM region per grid step
                pl.BlockSpec((None, n_se, tile), lambda j: (j, 0, 0)),
                pl.BlockSpec((None, n_tex, tile), lambda j: (j, 0, 0)),
                pl.BlockSpec((1, tile), lambda j: (0, j)),
                pl.BlockSpec((1, tile), lambda j: (0, j)),
            ],
            out_specs=[
                pl.BlockSpec((B, tile), lambda j: (0, j)),
                pl.BlockSpec((B, tile), lambda j: (0, j)),
            ],
        ),
        compiler_params=pltpu.CompilerParams(dimension_semantics=("parallel",)),
    )(coef_se, coef_tex, basis_se_t, basis_tex_t,
      fm["meanshape_pad"], fm["meantex_pad"])


def illumination_pallas(face_texture, norm_r, gamma):
    B, N, _ = norm_r.shape
    init_lit = jnp.array([0.8, 0, 0, 0, 0, 0, 0, 0, 0], jnp.float32)
    gamma3 = gamma.reshape(B, 3, 9) + init_lit.reshape(1, 1, 9)

    tile = _pick_tile_two_steps(N, ILLUM_TILE_MAX)
    n_pad = _round_up(N, tile)

    norm_t = jnp.transpose(norm_r, (0, 2, 1))        # (B, 3, N) channel-major
    tex_t = jnp.transpose(face_texture, (0, 2, 1))   # (B, 3, N)
    if n_pad != N:
        pad = ((0, 0), (0, 0), (0, n_pad - N))
        norm_t = jnp.pad(norm_t, pad)
        tex_t = jnp.pad(tex_t, pad)

    out_t = pl.pallas_call(
        _illumination_kernel,
        out_shape=jax.ShapeDtypeStruct((B, 3, n_pad), jnp.float32),
        grid_spec=pltpu.PrefetchScalarGridSpec(
            num_scalar_prefetch=0,
            grid=(n_pad // tile,),
            in_specs=[
                pl.BlockSpec((B, 3, tile), lambda j: (0, 0, j)),
                pl.BlockSpec((B, 3, tile), lambda j: (0, 0, j)),
                pl.BlockSpec((B, 3, 9), lambda j: (0, 0, 0)),
            ],
            out_specs=pl.BlockSpec((B, 3, tile), lambda j: (0, 0, j)),
        ),
        compiler_params=pltpu.CompilerParams(dimension_semantics=("parallel",)),
    )(norm_t, tex_t, gamma3)
    return jnp.transpose(out_t[:, :, :N], (0, 2, 1))  # (B, N, 3)


# =============================== model prep (once, at load time) ==================
def prepare_facemodel(fm):
    """Precompute pre-tiled, transposed, concatenated, bf16, lane-padded bases."""
    idB = fm["idBase"].astype(jnp.float32)    # (M, N_ID)
    exB = fm["exBase"].astype(jnp.float32)    # (M, N_EX)
    texB = fm["texBase"].astype(jnp.float32)  # (M, N_TEX)
    M = idB.shape[0]
    tile = _pick_tile(M, VERT_TILE_TARGET)
    m_pad = _round_up(M, tile)
    n_blk = m_pad // tile

    def pad_cols(x):
        if x.shape[1] == m_pad:
            return x
        return jnp.pad(x, ((0, 0), (0, m_pad - x.shape[1])))

    def pretile(x_t):
        """(R, M) basis.T -> (n_blk, R, tile) bf16, contiguous per block."""
        xp = pad_cols(x_t)
        r = xp.shape[0]
        return jnp.transpose(xp.reshape(r, n_blk, tile), (1, 0, 2)).astype(jnp.bfloat16)

    basis_se_t = pretile(jnp.concatenate([idB, exB], axis=1).T)
    basis_tex_t = pretile(texB.T)

    # fold mean-centering of the shape into the mean itself
    meanshape = fm["meanshape"].astype(jnp.float32).reshape(1, M)
    mean_center = jnp.mean(meanshape.reshape(-1, 3), axis=0)            # (3,)
    meanshape_centered = meanshape - jnp.tile(mean_center, M // 3).reshape(1, M)
    meanshape_pad = pad_cols(meanshape_centered)
    meantex_pad = pad_cols(fm["meantex"].astype(jnp.float32).reshape(1, M))

    prep = dict(fm)
    prep.update({
        "basis_se_t": basis_se_t,
        "basis_tex_t": basis_tex_t,
        "meanshape_pad": meanshape_pad,
        "meantex_pad": meantex_pad,
        "vert_tile": tile,      # python int (static)
        "m_orig": M,            # python int (static)
    })
    return prep


# =============================== plain-JAX glue ====================================
def split_coeff(coeff):
    id_coeff = coeff[:, :80]
    ex_coeff = coeff[:, 80:144]
    tex_coeff = coeff[:, 144:224]
    angles = coeff[:, 224:227]
    gamma = coeff[:, 227:254]
    translation = coeff[:, 254:257]
    B = coeff.shape[0]
    camera_scale = jnp.ones((B, 1), jnp.float32)
    f_scale = jnp.ones((B, 1), jnp.float32)
    return id_coeff, ex_coeff, tex_coeff, angles, translation, gamma, camera_scale, f_scale


def compute_rotation_matrix(angles):
    n = angles.shape[0]
    cx, sx = jnp.cos(angles[:, 0]), jnp.sin(angles[:, 0])
    cy, sy = jnp.cos(angles[:, 1]), jnp.sin(angles[:, 1])
    cz, sz = jnp.cos(angles[:, 2]), jnp.sin(angles[:, 2])
    one = jnp.ones((n,), jnp.float32)
    zero = jnp.zeros((n,), jnp.float32)
    rx = jnp.stack([one, zero, zero, zero, cx, -sx, zero, sx, cx], 1).reshape(n, 3, 3)
    ry = jnp.stack([cy, zero, sy, zero, one, zero, -sy, zero, cy], 1).reshape(n, 3, 3)
    rz = jnp.stack([cz, -sz, zero, sz, cz, zero, zero, zero, one], 1).reshape(n, 3, 3)
    rot = jnp.matmul(jnp.matmul(rz, ry), rx)
    return jnp.transpose(rot, (0, 2, 1))


def compute_norm(face_shape, face_buf, point_buf):
    B = face_shape.shape[0]
    fid = (face_buf - 1).astype(jnp.int32)    # (F, 3)
    pid = (point_buf - 1).astype(jnp.int32)   # (N, 8)
    v1 = face_shape[:, fid[:, 0], :]
    v2 = face_shape[:, fid[:, 1], :]
    v3 = face_shape[:, fid[:, 2], :]
    e1 = v1 - v2
    e2 = v2 - v3
    fn = jnp.cross(e1, e2, axis=-1)
    fn = fn / jnp.maximum(jnp.linalg.norm(fn, axis=2, keepdims=True), 1e-12)
    fn = jnp.concatenate([fn, jnp.zeros((B, 1, 3), jnp.float32)], axis=1)
    tmp = fn[:, pid, :]                       # (B, N, 8, 3)
    v_norm = jnp.sum(tmp, axis=2)             # (B, N, 3)
    v_norm = v_norm / jnp.maximum(jnp.linalg.norm(v_norm, axis=2, keepdims=True), 1e-12)
    return v_norm


def rigid_transform(face_shape, rotation, translation):
    B = face_shape.shape[0]
    return jnp.matmul(face_shape, rotation) + translation.reshape(B, 1, 3)


def projection_block(face_shape, camera_scale, f_scale):
    B = face_shape.shape[0]
    focal = (1015.0 * f_scale).reshape(-1, 1)
    camera_pos = jnp.array([0.0, 0.0, 10.0], jnp.float32).reshape(1, 1, 3) \
        * camera_scale.reshape(-1, 1, 1)
    reverse_z = jnp.tile(
        jnp.array([1.0, 0, 0, 0, 1, 0, 0, 0, -1.0], jnp.float32).reshape(1, 3, 3),
        (B, 1, 1))
    p_matrix = jnp.concatenate(
        [focal, jnp.zeros((B, 1)), 112.0 * jnp.ones((B, 1)),
         jnp.zeros((B, 1)), focal, 112.0 * jnp.ones((B, 1)),
         jnp.zeros((B, 2)), jnp.ones((B, 1))], axis=1).reshape(B, 3, 3)
    fs = jnp.matmul(face_shape, reverse_z) + camera_pos
    aug = jnp.matmul(fs, jnp.transpose(p_matrix, (0, 2, 1)))
    return aug[:, :, 0:2] / aug[:, :, 2:3]


def compute_landmark(face_shape, keypoints):
    kp = (keypoints - 1).astype(jnp.int32)
    return face_shape[:, kp, :]


def render_block(face_shape, face_norm, face_color, camera_scale, f_scale, fm, batchsize):
    n_vex = fm["idBase"].shape[0] // 3
    fov_y = float(2.0 * math.atan(112.0 / 1015.0) * 180.0 / math.pi)
    mask_idx = (fm["front_mask_render"] - 1).astype(jnp.int32)
    return {
        "n_vex": n_vex,
        "fov_y": fov_y,
        "face_shape": face_shape,
        "face_norm": face_norm,
        "face_color": face_color,
        "mask_face_shape": face_shape[:, mask_idx, :],
        "mask_face_norm": face_norm[:, mask_idx, :],
        "mask_face_color": face_color[:, mask_idx, :],
        "camera_position": jnp.array([0, 0, 10.0], jnp.float32) * camera_scale.reshape(-1, 1),
        "camera_look_at": jnp.zeros((1, 3), jnp.float32),
        "camera_up": jnp.array([[0.0, 1.0, 0.0]], jnp.float32),
        "light_positions": jnp.tile(
            jnp.array([0.0, 0.0, 100000.0], jnp.float32).reshape(1, 1, 3), (batchsize, 1, 1)),
        "light_intensities": jnp.zeros((batchsize, 1, 3), jnp.float32),
        "ambient_color": jnp.ones((batchsize, 3), jnp.float32),
    }


# =============================== Face3D forward ====================================
def face3d_forward(coeff, fm):
    B = coeff.shape[0]
    (id_coeff, ex_coeff, tex_coeff, angles, translation,
     gamma, camera_scale, f_scale) = split_coeff(coeff)

    M = fm["m_orig"]

    # --- Pallas hot path: fused shape + texture basis matmuls (mean-centering folded in)
    shape_flat, tex_flat = formation_pallas(id_coeff, ex_coeff, tex_coeff, fm)
    face_shape = shape_flat[:, :M].reshape(B, -1, 3)
    face_texture = tex_flat[:, :M].reshape(B, -1, 3)

    rotation = compute_rotation_matrix(angles)
    face_norm = compute_norm(face_shape, fm["face_buf"], fm["point_buf"])
    norm_r = jnp.matmul(face_norm, rotation)
    face_shape_t = rigid_transform(face_shape, rotation, translation)
    face_landmark_t = compute_landmark(face_shape_t, fm["keypoints"])
    landmark_p = projection_block(face_landmark_t, camera_scale, f_scale)

    # --- Pallas hot path: per-vertex SH illumination ---
    face_color = illumination_pallas(face_texture, norm_r, gamma)

    rb = render_block(face_shape_t, norm_r, face_color, camera_scale, f_scale, fm, B)

    # TODO(synk): mesh rasterization / SoftPhongShader (rendered_img, img_mask) omitted —
    #             no Pallas equivalent for pytorch3d's renderer.
    return {
        "landmark_p": landmark_p,
        "id_coeff": id_coeff,
        "ex_coeff": ex_coeff,
        "tex_coeff": tex_coeff,
        "face_texture": face_texture,
        "face_color": face_color,
        "face_shape": face_shape,
        "face_shape_t": face_shape_t,
        "gamma": gamma,
        "render_block": rb,
    }


# =============================== synthetic BFM =====================================
def make_facemodel(key):
    ks = jax.random.split(key, 12)
    fm = {
        "meanshape": jax.random.normal(ks[0], (1, 3 * N_VERT), jnp.float32) * 0.5,
        "idBase": jax.random.normal(ks[1], (3 * N_VERT, N_ID), jnp.float32) * 0.05,
        "exBase": jax.random.normal(ks[2], (3 * N_VERT, N_EX), jnp.float32) * 0.05,
        "meantex": jax.random.uniform(ks[3], (1, 3 * N_VERT), jnp.float32, 0.2, 0.8) * 255.0,
        "texBase": jax.random.normal(ks[4], (3 * N_VERT, N_TEX), jnp.float32) * 0.05,
        # 1-based indices, like the .mat file
        "face_buf": jax.random.randint(ks[5], (N_FACE, 3), 1, N_VERT + 1).astype(jnp.int32),
        # point_buf entries in [1, N_FACE+1]; value N_FACE+1 maps to the appended zero-normal row
        "point_buf": jax.random.randint(ks[6], (N_VERT, 8), 1, N_FACE + 2).astype(jnp.int32),
        "front_mask_render": jax.random.randint(ks[7], (N_MASK_VERT,), 1, N_VERT + 1).astype(jnp.int32),
        "mask_face_buf": jax.random.randint(ks[8], (N_MASK_FACE, 3), 1, N_VERT + 1).astype(jnp.int32),
        "skin_mask": jax.random.randint(ks[9], (N_VERT,), 0, 2).astype(jnp.int32),
        "keypoints": jax.random.randint(ks[10], (N_KP,), 1, N_VERT + 1).astype(jnp.int32),
    }
    return fm


if __name__ == "__main__":
    key = jax.random.PRNGKey(0)
    k_model, k_coeff = jax.random.split(key)
    facemodel = prepare_facemodel(make_facemodel(k_model))

    batch = 2
    coeff = jax.random.normal(k_coeff, (batch, COEFF_DIM), jnp.float32) * 0.1

    fwd = jax.jit(lambda c: face3d_forward(c, facemodel))
    out = fwd(coeff)

    jax.block_until_ready(out["face_color"])
    jax.block_until_ready(out["landmark_p"])
    jax.block_until_ready(out["render_block"]["mask_face_color"])

    assert out["face_color"].shape == (batch, N_VERT, 3)
    assert out["landmark_p"].shape == (batch, N_KP, 2)
    assert out["face_texture"].shape == (batch, N_VERT, 3)
    assert out["face_shape"].shape == (batch, N_VERT, 3)
    assert bool(jnp.all(jnp.isfinite(out["face_color"])))
    assert bool(jnp.all(jnp.isfinite(out["landmark_p"])))
    print("KERNEL_OK")
</pallas_src>

<mosaic_0001>
module attributes {stable_mosaic.version = 11 : i64} {
  func.func @_formation_kernel(%arg0: i32, %arg1: memref<2x144xbf16, #tpu.memory_space<vmem>>, %arg2: memref<2x80xbf16, #tpu.memory_space<vmem>>, %arg3: memref<1x144x768xbf16, #tpu.memory_space<vmem>>, %arg4: memref<1x80x768xbf16, #tpu.memory_space<vmem>>, %arg5: memref<1x768xf32, #tpu.memory_space<vmem>>, %arg6: memref<1x768xf32, #tpu.memory_space<vmem>>, %arg7: memref<2x768xf32, #tpu.memory_space<vmem>>, %arg8: memref<2x768xf32, #tpu.memory_space<vmem>>) attributes {dimension_semantics = [#tpu.dimension_semantics<parallel>], iteration_bounds = array<i64: 1>, scalar_prefetch = 0 : i64, scratch_operands = 0 : i64, tpu.core_type = #tpu.core_type<tc>, window_params = [{pipeline_mode = #tpu.pipeline_mode<synchronous>, transform_indices = @transform_0, window_bounds = array<i64: 2, 144>}, {pipeline_mode = #tpu.pipeline_mode<synchronous>, transform_indices = @transform_1, window_bounds = array<i64: 2, 80>}, {transform_indices = @transform_2, window_bounds = array<i64: 1, 144, 768>}, {transform_indices = @transform_3, window_bounds = array<i64: 1, 80, 768>}, {transform_indices = @transform_4, window_bounds = array<i64: 1, 768>}, {transform_indices = @transform_5, window_bounds = array<i64: 1, 768>}, {transform_indices = @transform_6, window_bounds = array<i64: 2, 768>}, {transform_indices = @transform_7, window_bounds = array<i64: 2, 768>}]} {
    %c0 = arith.constant 0 : index
    %c0_0 = arith.constant 0 : index
    %0 = vector.load %arg1[%c0, %c0_0] : memref<2x144xbf16, #tpu.memory_space<vmem>>, vector<2x144xbf16>
    %c0_1 = arith.constant 0 : index
    %c0_2 = arith.constant 0 : index
    %c0_3 = arith.constant 0 : index
    %1 = vector.load %arg3[%c0_1, %c0_2, %c0_3] : memref<1x144x768xbf16, #tpu.memory_space<vmem>>, vector<1x144x768xbf16>
    %2 = vector.shape_cast %1 : vector<1x144x768xbf16> to vector<144x768xbf16>
    %cst = arith.constant dense<0.000000e+00> : vector<2x768xf32>
    %3 = tpu.matmul %0, %2, %cst {dimension_numbers = #tpu.dot_dimension_numbers<[1], [0], [0], [1], [0, 0, 1, 1], [], []>} : vector<2x144xbf16>, vector<144x768xbf16>, vector<2x768xf32> -> vector<2x768xf32>
    %c0_4 = arith.constant 0 : index
    %c0_5 = arith.constant 0 : index
    %4 = vector.load %arg5[%c0_4, %c0_5] : memref<1x768xf32, #tpu.memory_space<vmem>>, vector<1x768xf32>
    %5 = vector.broadcast %4 : vector<1x768xf32> to vector<2x768xf32>
    %6 = arith.addf %3, %5 : vector<2x768xf32>
    %c0_6 = arith.constant 0 : index
    %c0_7 = arith.constant 0 : index
    %7 = vector.load %arg7[%c0_6, %c0_7] : memref<2x768xf32, #tpu.memory_space<vmem>>, vector<2x768xf32>
    tpu.vector_store %arg7[%c0_6, %c0_7], %6 {strides = array<i32>} : memref<2x768xf32, #tpu.memory_space<vmem>>, vector<2x768xf32>,
    %c0_8 = arith.constant 0 : index
    %c0_9 = arith.constant 0 : index
    %8 = vector.load %arg2[%c0_8, %c0_9] : memref<2x80xbf16, #tpu.memory_space<vmem>>, vector<2x80xbf16>
    %c0_10 = arith.constant 0 : index
    %c0_11 = arith.constant 0 : index
    %c0_12 = arith.constant 0 : index
    %9 = vector.load %arg4[%c0_10, %c0_11, %c0_12] : memref<1x80x768xbf16, #tpu.memory_space<vmem>>, vector<1x80x768xbf16>
    %10 = vector.shape_cast %9 : vector<1x80x768xbf16> to vector<80x768xbf16>
    %cst_13 = arith.constant dense<0.000000e+00> : vector<2x768xf32>
    %11 = tpu.matmul %8, %10, %cst_13 {dimension_numbers = #tpu.dot_dimension_numbers<[1], [0], [0], [1], [0, 0, 1, 1], [], []>} : vector<2x80xbf16>, vector<80x768xbf16>, vector<2x768xf32> -> vector<2x768xf32>
    %c0_14 = arith.constant 0 : index
    %c0_15 = arith.constant 0 : index
    %12 = vector.load %arg6[%c0_14, %c0_15] : memref<1x768xf32, #tpu.memory_space<vmem>>, vector<1x768xf32>
    %13 = vector.broadcast %12 : vector<1x768xf32> to vector<2x768xf32>
    %14 = arith.addf %11, %13 : vector<2x768xf32>
    %c0_16 = arith.constant 0 : index
    %c0_17 = arith.constant 0 : index
    %15 = vector.load %arg8[%c0_16, %c0_17] : memref<2x768xf32, #tpu.memory_space<vmem>>, vector<2x768xf32>
    tpu.vector_store %arg8[%c0_16, %c0_17], %14 {strides = array<i32>} : memref<2x768xf32, #tpu.memory_space<vmem>>, vector<2x768xf32>,
    return
  }
  func.func @transform_0(%arg0: i32) -> (i32, i32) {
    %c0_i32 = arith.constant 0 : i32
    %c0_i32_0 = arith.constant 0 : i32
    %c0_i32_1 = arith.constant 0 : i32
    return %c0_i32, %c0_i32_0 : i32, i32
  }
  func.func @transform_1(%arg0: i32) -> (i32, i32) {
    %c0_i32 = arith.constant 0 : i32
    %c0_i32_0 = arith.constant 0 : i32
    %c0_i32_1 = arith.constant 0 : i32
    return %c0_i32, %c0_i32_0 : i32, i32
  }
  func.func @transform_2(%arg0: i32) -> (i32, i32, i32) {
    %c0_i32 = arith.constant 0 : i32
    %c0_i32_0 = arith.constant 0 : i32
    %c0_i32_1 = arith.constant 0 : i32
    return %arg0, %c0_i32, %c0_i32_0 : i32, i32, i32
  }
  func.func @transform_3(%arg0: i32) -> (i32, i32, i32) {
    %c0_i32 = arith.constant 0 : i32
    %c0_i32_0 = arith.constant 0 : i32
    %c0_i32_1 = arith.constant 0 : i32
    return %arg0, %c0_i32, %c0_i32_0 : i32, i32, i32
  }
  func.func @transform_4(%arg0: i32) -> (i32, i32) {
    %c0_i32 = arith.constant 0 : i32
    %c0_i32_0 = arith.constant 0 : i32
    return %c0_i32, %arg0 : i32, i32
  }
  func.func @transform_5(%arg0: i32) -> (i32, i32) {
    %c0_i32 = arith.constant 0 : i32
    %c0_i32_0 = arith.constant 0 : i32
    return %c0_i32, %arg0 : i32, i32
  }
  func.func @transform_6(%arg0: i32) -> (i32, i32) {
    %c0_i32 = arith.constant 0 : i32
    %c0_i32_0 = arith.constant 0 : i32
    return %c0_i32, %arg0 : i32, i32
  }
  func.func @transform_7(%arg0: i32) -> (i32, i32) {
    %c0_i32 = arith.constant 0 : i32
    %c0_i32_0 = arith.constant 0 : i32
    return %c0_i32, %arg0 : i32, i32
  }
}

module attributes {stable_mosaic.version = 11 : i64} {
  func.func @_illumination_kernel(%arg0: i32, %arg1: memref<2x3x128xf32, #tpu.memory_space<vmem>>, %arg2: memref<2x3x128xf32, #tpu.memory_space<vmem>>, %arg3: memref<2x3x9xf32, #tpu.memory_space<vmem>>, %arg4: memref<2x3x128xf32, #tpu.memory_space<vmem>>) attributes {dimension_semantics = [#tpu.dimension_semantics<parallel>], iteration_bounds = array<i64: 2>, scalar_prefetch = 0 : i64, scratch_operands = 0 : i64, tpu.core_type = #tpu.core_type<tc>, window_params = [{transform_indices = @transform_0, window_bounds = array<i64: 2, 3, 128>}, {transform_indices = @transform_1, window_bounds = array<i64: 2, 3, 128>}, {pipeline_mode = #tpu.pipeline_mode<synchronous>, transform_indices = @transform_2, window_bounds = array<i64: 2, 3, 9>}, {transform_indices = @transform_3, window_bounds = array<i64: 2, 3, 128>}]} {
    %c0 = arith.constant 0 : index
    %c0_0 = arith.constant 0 : index
    %c0_1 = arith.constant 0 : index
    %0 = vector.load %arg1[%c0, %c0_0, %c0_1] : memref<2x3x128xf32, #tpu.memory_space<vmem>>, vector<2x3x128xf32>
    %c0_2 = arith.constant 0 : index
    %c0_3 = arith.constant 0 : index
    %c0_4 = arith.constant 0 : index
    %1 = vector.load %arg2[%c0_2, %c0_3, %c0_4] : memref<2x3x128xf32, #tpu.memory_space<vmem>>, vector<2x3x128xf32>
    %c0_5 = arith.constant 0 : index
    %c0_6 = arith.constant 0 : index
    %c0_7 = arith.constant 0 : index
    %2 = vector.load %arg3[%c0_5, %c0_6, %c0_7] : memref<2x3x9xf32, #tpu.memory_space<vmem>>, vector<2x3x9xf32>
    %3 = vector.extract_strided_slice %0 {offsets = [0, 0, 0], sizes = [2, 1, 128], strides = [1, 1, 1]} : vector<2x3x128xf32> to vector<2x1x128xf32>
    %4 = vector.extract_strided_slice %0 {offsets = [0, 1, 0], sizes = [2, 1, 128], strides = [1, 1, 1]} : vector<2x3x128xf32> to vector<2x1x128xf32>
    %5 = vector.extract_strided_slice %0 {offsets = [0, 2, 0], sizes = [2, 1, 128], strides = [1, 1, 1]} : vector<2x3x128xf32> to vector<2x1x128xf32>
    %6 = vector.extract_strided_slice %2 {offsets = [0, 0, 0], sizes = [2, 3, 1], strides = [1, 1, 1]} : vector<2x3x9xf32> to vector<2x3x1xf32>
    %cst = arith.constant 0.886226952 : f32
    %7 = vector.broadcast %cst : f32 to vector<2x3x1xf32>
    %8 = arith.mulf %6, %7 : vector<2x3x1xf32>
    %9 = vector.extract_strided_slice %2 {offsets = [0, 0, 1], sizes = [2, 3, 1], strides = [1, 1, 1]} : vector<2x3x9xf32> to vector<2x3x1xf32>
    %cst_8 = arith.constant -1.7724539 : f32
    %10 = vector.broadcast %cst_8 : f32 to vector<2x1x128xf32>
    %11 = arith.mulf %10, %4 : vector<2x1x128xf32>
    %12 = vector.broadcast %9 : vector<2x3x1xf32> to vector<2x3x128xf32>
    %13 = vector.broadcast %11 : vector<2x1x128xf32> to vector<2x3x128xf32>
    %14 = arith.mulf %12, %13 : vector<2x3x128xf32>
    %15 = vector.broadcast %8 : vector<2x3x1xf32> to vector<2x3x128xf32>
    %16 = arith.addf %15, %14 : vector<2x3x128xf32>
    %17 = vector.extract_strided_slice %2 {offsets = [0, 0, 2], sizes = [2, 3, 1], strides = [1, 1, 1]} : vector<2x3x9xf32> to vector<2x3x1xf32>
    %cst_9 = arith.constant 1.7724539 : f32
    %18 = vector.broadcast %cst_9 : f32 to vector<2x1x128xf32>
    %19 = arith.mulf %18, %5 : vector<2x1x128xf32>
    %20 = vector.broadcast %17 : vector<2x3x1xf32> to vector<2x3x128xf32>
    %21 = vector.broadcast %19 : vector<2x1x128xf32> to vector<2x3x128xf32>
    %22 = arith.mulf %20, %21 : vector<2x3x128xf32>
    %23 = arith.addf %16, %22 : vector<2x3x128xf32>
    %24 = vector.extract_strided_slice %2 {offsets = [0, 0, 3], sizes = [2, 3, 1], strides = [1, 1, 1]} : vector<2x3x9xf32> to vector<2x3x1xf32>
    %cst_10 = arith.constant -1.7724539 : f32
    %25 = vector.broadcast %cst_10 : f32 to vector<2x1x128xf32>
    %26 = arith.mulf %25, %3 : vector<2x1x128xf32>
    %27 = vector.broadcast %24 : vector<2x3x1xf32> to vector<2x3x128xf32>
    %28 = vector.broadcast %26 : vector<2x1x128xf32> to vector<2x3x128xf32>
    %29 = arith.mulf %27, %28 : vector<2x3x128xf32>
    %30 = arith.addf %23, %29 : vector<2x3x128xf32>
    %31 = vector.extract_strided_slice %2 {offsets = [0, 0, 4], sizes = [2, 3, 1], strides = [1, 1, 1]} : vector<2x3x9xf32> to vector<2x3x1xf32>
    %32 = arith.mulf %3, %4 : vector<2x1x128xf32>
    %cst_11 = arith.constant 2.42703247 : f32
    %33 = vector.broadcast %cst_11 : f32 to vector<2x1x128xf32>
    %34 = arith.mulf %33, %32 : vector<2x1x128xf32>
    %35 = vector.broadcast %31 : vector<2x3x1xf32> to vector<2x3x128xf32>
    %36 = vector.broadcast %34 : vector<2x1x128xf32> to vector<2x3x128xf32>
    %37 = arith.mulf %35, %36 : vector<2x3x128xf32>
    %38 = arith.addf %30, %37 : vector<2x3x128xf32>
    %39 = vector.extract_strided_slice %2 {offsets = [0, 0, 5], sizes = [2, 3, 1], strides = [1, 1, 1]} : vector<2x3x9xf32> to vector<2x3x1xf32>
    %40 = arith.mulf %4, %5 : vector<2x1x128xf32>
    %cst_12 = arith.constant -2.42703247 : f32
    %41 = vector.broadcast %cst_12 : f32 to vector<2x1x128xf32>
    %42 = arith.mulf %41, %40 : vector<2x1x128xf32>
    %43 = vector.broadcast %39 : vector<2x3x1xf32> to vector<2x3x128xf32>
    %44 = vector.broadcast %42 : vector<2x1x128xf32> to vector<2x3x128xf32>
    %45 = arith.mulf %43, %44 : vector<2x3x128xf32>
    %46 = arith.addf %38, %45 : vector<2x3x128xf32>
    %47 = vector.extract_strided_slice %2 {offsets = [0, 0, 6], sizes = [2, 3, 1], strides = [1, 1, 1]} : vector<2x3x9xf32> to vector<2x3x1xf32>
    %cst_13 = arith.constant 3.000000e+00 : f32
    %48 = vector.broadcast %cst_13 : f32 to vector<2x1x128xf32>
    %49 = arith.mulf %48, %5 : vector<2x1x128xf32>
    %50 = arith.mulf %49, %5 : vector<2x1x128xf32>
    %cst_14 = arith.constant 1.000000e+00 : f32
    %51 = vector.broadcast %cst_14 : f32 to vector<2x1x128xf32>
    %52 = arith.subf %50, %51 : vector<2x1x128xf32>
    %cst_15 = arith.constant 0.700623929 : f32
    %53 = vector.broadcast %cst_15 : f32 to vector<2x1x128xf32>
    %54 = arith.mulf %53, %52 : vector<2x1x128xf32>
    %55 = vector.broadcast %47 : vector<2x3x1xf32> to vector<2x3x128xf32>
    %56 = vector.broadcast %54 : vector<2x1x128xf32> to vector<2x3x128xf32>
    %57 = arith.mulf %55, %56 : vector<2x3x128xf32>
    %58 = arith.addf %46, %57 : vector<2x3x128xf32>
    %59 = vector.extract_strided_slice %2 {offsets = [0, 0, 7], sizes = [2, 3, 1], strides = [1, 1, 1]} : vector<2x3x9xf32> to vector<2x3x1xf32>
    %60 = arith.mulf %3, %5 : vector<2x1x128xf32>
    %cst_16 = arith.constant -2.42703247 : f32
    %61 = vector.broadcast %cst_16 : f32 to vector<2x1x128xf32>
    %62 = arith.mulf %61, %60 : vector<2x1x128xf32>
    %63 = vector.broadcast %59 : vector<2x3x1xf32> to vector<2x3x128xf32>
    %64 = vector.broadcast %62 : vector<2x1x128xf32> to vector<2x3x128xf32>
    %65 = arith.mulf %63, %64 : vector<2x3x128xf32>
    %66 = arith.addf %58, %65 : vector<2x3x128xf32>
    %67 = vector.extract_strided_slice %2 {offsets = [0, 0, 8], sizes = [2, 3, 1], strides = [1, 1, 1]} : vector<2x3x9xf32> to vector<2x3x1xf32>
    %68 = arith.mulf %3, %3 : vector<2x1x128xf32>
    %69 = arith.mulf %4, %4 : vector<2x1x128xf32>
    %70 = arith.subf %68, %69 : vector<2x1x128xf32>
    %cst_17 = arith.constant 1.21351624 : f32
    %71 = vector.broadcast %cst_17 : f32 to vector<2x1x128xf32>
    %72 = arith.mulf %71, %70 : vector<2x1x128xf32>
    %73 = vector.broadcast %67 : vector<2x3x1xf32> to vector<2x3x128xf32>
    %74 = vector.broadcast %72 : vector<2x1x128xf32> to vector<2x3x128xf32>
    %75 = arith.mulf %73, %74 : vector<2x3x128xf32>
    %76 = arith.addf %66, %75 : vector<2x3x128xf32>
    %77 = arith.mulf %76, %1 : vector<2x3x128xf32>
    %c0_18 = arith.constant 0 : index
    %c0_19 = arith.constant 0 : index
    %c0_20 = arith.constant 0 : index
    %78 = vector.load %arg4[%c0_18, %c0_19, %c0_20] : memref<2x3x128xf32, #tpu.memory_space<vmem>>, vector<2x3x128xf32>
    tpu.vector_store %arg4[%c0_18, %c0_19, %c0_20], %77 {strides = array<i32>} : memref<2x3x128xf32, #tpu.memory_space<vmem>>, vector<2x3x128xf32>,
    return
  }
  func.func @transform_0(%arg0: i32) -> (i32, i32, i32) {
    %c0_i32 = arith.constant 0 : i32
    %c0_i32_0 = arith.constant 0 : i32
    %c0_i32_1 = arith.constant 0 : i32
    return %c0_i32, %c0_i32_0, %arg0 : i32, i32, i32
  }
  func.func @transform_1(%arg0: i32) -> (i32, i32, i32) {
    %c0_i32 = arith.constant 0 : i32
    %c0_i32_0 = arith.constant 0 : i32
    %c0_i32_1 = arith.constant 0 : i32
    return %c0_i32, %c0_i32_0, %arg0 : i32, i32, i32
  }
  func.func @transform_2(%arg0: i32) -> (i32, i32, i32) {
    %c0_i32 = arith.constant 0 : i32
    %c0_i32_0 = arith.constant 0 : i32
    %c0_i32_1 = arith.constant 0 : i32
    %c0_i32_2 = arith.constant 0 : i32
    return %c0_i32, %c0_i32_0, %c0_i32_1 : i32, i32, i32
  }
  func.func @transform_3(%arg0: i32) -> (i32, i32, i32) {
    %c0_i32 = arith.constant 0 : i32
    %c0_i32_0 = arith.constant 0 : i32
    %c0_i32_1 = arith.constant 0 : i32
    return %c0_i32, %c0_i32_0, %arg0 : i32, i32, i32
  }
}

</mosaic_0001>

<bundles_post_ra>
// kernel: _lambda_.2
= control target key start
LH: loop header
LB: loop body
LE: loop exit
PB: predicated region body
PF: predicated region fallthrough
CT: control target
= control target key end

     0   :  { %13 = vsyncpa [#allocation3], 0  ;;  %s1423_s0 = inlined_call_operand.vmem [shape: bf16[2,144], index: 0, kind: input, shape index: {}]   ;;  %s1424_s1 = inlined_call_operand.vmem [shape: bf16[2,80], index: 1, kind: input, shape index: {}]   ;;  %s1425_s2 = inlined_call_operand.hbm [shape: bf16[1,144,768], index: 2, kind: input, shape index: {}]   ;;  %s1426_s3 = inlined_call_operand.hbm [shape: bf16[1,80,768], index: 3, kind: input, shape index: {}]   ;;  %s1427_s4 = inlined_call_operand.hbm [shape: f32[1,768], index: 4, kind: input, shape index: {}]   ;;  %s1428_s5 = inlined_call_operand.hbm [shape: f32[1,768], index: 5, kind: input, shape index: {}]   ;;  %s1429_s6 = inlined_call_operand.vmem [shape: f32[2,768], index: 6, kind: output, shape index: {0}]   ;;  %s1430_s7 = inlined_call_operand.vmem [shape: f32[2,768], index: 7, kind: output, shape index: {1}]  }
   0x1   :  { %14 = vsyncpa [#allocation5], 0 }
   0x2   :  { %15 = vsyncpa [#allocation8], 0  ;;  %s1320_s24 = smov [#allocation4]   ;;  %s1321_s26 = smov [#allocation2]  }
   0x3   :  { %s37_s25 = sshll.u32 %s1320_s24, 4  ;;  %s25_s27 = sshll.u32 %s1321_s26, 4  ;;  %s38_s25 = int_to_ptr.vmem [resolvable:$true] %s37_s25  ;;  %s26_s27 = int_to_ptr.vmem [resolvable:$true] %s25_s27 }
   0x4   :  { %s1242_s28 = scalar_lea.vmem %s38_s25, 3840  ;;  %p1247_p1 = scmp.lt.s32.totalorder %s38_s25, %s38_s25 }
   0x5   :  { %p1243_p0 = scmp.ne.s32.totalorder %s38_s25, %s1242_s28  ;;  %p1248_p2 = scmp.lt.s32.totalorder %s1242_s28, %s1242_s28 }
   0x7   :  { %p1249_p3 = por %p1248_p2, %p1247_p1 }
   0x9   :  { %p1250_p4 = pnand %p1249_p3, %p1243_p0 }
   0xb   :  { %1253 = shalt.err (!%p1250_p4)
}
   0xc   :  { %s1322_s29 = smov 384   ;;  %s1323_s30 = smov 24  }
   0xd   :  { %43 = dma.hbm_to_vmem [thread:$0]  %s1426_s3, 3840, %s38_s25, [#allocation5], %s1322_s29, %s1322_s29, %s1323_s30  }
   0xe   :  { %s1262_s10 = scalar_lea.vmem %s26_s27, 6912  ;;  %p1267_p6 = scmp.lt.s32.totalorder %s26_s27, %s26_s27 }
   0xf   :  { %p1263_p5 = scmp.ne.s32.totalorder %s26_s27, %s1262_s10  ;;  %p1268_p7 = scmp.lt.s32.totalorder %s1262_s10, %s1262_s10 }
  0x11   :  { %p1269_p8 = por %p1268_p7, %p1267_p6 }
  0x13   :  { %p1270_p9 = pnand %p1269_p8, %p1263_p5 }
  0x15   :  { %1273 = shalt.err (!%p1270_p9)
}
  0x16   :  { %31 = dma.hbm_to_vmem [thread:$0]  %s1425_s2, 6912, %s26_s27, [#allocation3], %s1322_s29, %s1322_s29, %s1323_s30  }
  0x17   :  { %s1324_s13 = smov [#allocation6]   ;;  %s1325_s15 = smov [#allocation7]  }
  0x18   :  { %s50_s14 = sshll.u32 %s1324_s13, 4  ;;  %s60_s16 = sshll.u32 %s1325_s15, 4  ;;  %s51_s14 = int_to_ptr.vmem [resolvable:$true] %s50_s14  ;;  %s61_s16 = int_to_ptr.vmem [resolvable:$true] %s60_s16 }
  0x19   :  { %s1282_s17 = scalar_lea.vmem %s51_s14, 96  ;;  %p1287_p11 = scmp.lt.s32.totalorder %s51_s14, %s51_s14 }
  0x1a   :  { %p1283_p10 = scmp.ne.s32.totalorder %s51_s14, %s1282_s17  ;;  %p1288_p12 = scmp.lt.s32.totalorder %s1282_s17, %s1282_s17 }
  0x1c   :  { %p1289_p13 = por %p1288_p12, %p1287_p11 }
  0x1e   :  { %p1290_p0 = pnand %p1289_p13, %p1283_p10 }
  0x20   :  { %1293 = shalt.err (!%p1290_p0)
}
  0x21   :  { %53 = dma.hbm_to_vmem [thread:$0]  %s1427_s4, 96, %s51_s14, [#allocation5]  }
  0x22   :  { %s1302_s19 = scalar_lea.vmem %s61_s16, 96  ;;  %p1307_p2 = scmp.lt.s32.totalorder %s61_s16, %s61_s16 }
  0x23   :  { %p1303_p1 = scmp.ne.s32.totalorder %s61_s16, %s1302_s19  ;;  %p1308_p3 = scmp.lt.s32.totalorder %s1302_s19, %s1302_s19 }
  0x25   :  { %p1309_p4 = por %p1308_p3, %p1307_p2 }
  0x27   :  { %p1310_p5 = pnand %p1309_p4, %p1303_p1 }
  0x29   :  { %1313 = shalt.err (!%p1310_p5)
}
  0x2a   :  { %63 = dma.hbm_to_vmem [thread:$0]  %s1428_s5, 96, %s61_s16, [#allocation8]  }
  0x2b   :  { %1314 = dma.done.wait [#allocation3], 6912  }
  0x2c   :  { %1315 = vsyncadd [#allocation3], 4294960384 }
  0x2d   :  { %1316 = dma.done.wait [#allocation5], 3936  }
  0x2e   :  { %1317 = vsyncadd [#allocation5], 4294963360 }
  0x2f   :  { %1318 = dma.done.wait [#allocation8], 96  }
  0x30   :  { %1319 = vsyncadd [#allocation8], 4294967200  ;;  %v1108_v0 = vld [vmem:[#allocation2 + $0x154] ss:$24 sps:$4 sm:$0xff]   ;;  %v1112_v2 = vld [vmem:[#allocation2 + $0x150] ss:$24 sps:$4 sm:$0xff]   ;;  %v134_v20 = vlaneseq }
  0x31   :  { %v1110_v1 = vld [vmem:[#allocation2 + $0x15c] ss:$24 sps:$4 sm:$0xff]   ;;  %462 = vmatprep.subr.bf16.mxu0 %v1108_v0  ;;  %v1113_v3 = vld [vmem:[#allocation2 + $0x158] ss:$24 sps:$4 sm:$0xff]   ;;  %v1116_v5 = vld [vmem:[#allocation2 + $0x12c] ss:$24 sps:$4 sm:$0xff]  }
  0x32   :  { %503 = vmatprep.subr.bf16.mxu1 %v1110_v1  ;;  %v1114_v4 = vld [vmem:[#allocation2 + $0x124] ss:$24 sps:$4 sm:$0xff]   ;;  %463 = vmatpush1.bf16.msra.mxu0 %v1112_v2  ;;  %v1118_v6 = vld [vmem:[#allocation2 + $0x120] ss:$24 sps:$4 sm:$0xff]   ;;  %v1120_v8 = vld [vmem:[#allocation2 + $0xf4] ss:$24 sps:$4 sm:$0xff]  }
  0x33   :  { %504 = vmatpush1.bf16.msra.mxu1 %v1113_v3  ;;  %464 = vmatprep.subr.bf16.mxu0 %v1114_v4  ;;  %v1119_v7 = vld [vmem:[#allocation2 + $0x128] ss:$24 sps:$4 sm:$0xff]   ;;  %v1122_v9 = vld [vmem:[#allocation2 + $0xfc] ss:$24 sps:$4 sm:$0xff]   ;;  %v1125_v11 = vld [vmem:[#allocation2 + $0xf8] ss:$24 sps:$4 sm:$0xff]  }
  0x34   :  { %505 = vmatprep.subr.bf16.mxu1 %v1116_v5  ;;  %v1124_v10 = vld [vmem:[#allocation2 + $0xf0] ss:$24 sps:$4 sm:$0xff]   ;;  %v1126_v12 = vld [vmem:[#allocation2 + $0xc4] ss:$24 sps:$4 sm:$0xff]   ;;  %v1130_v14 = vld [vmem:[#allocation2 + $0xc0] ss:$24 sps:$4 sm:$0xff]  }
  0x35   :  { %v1128_v13 = vld [vmem:[#allocation2 + $0xcc] ss:$24 sps:$4 sm:$0xff]   ;;  %v1131_v15 = vld [vmem:[#allocation2 + $0xc8] ss:$24 sps:$4 sm:$0xff]   ;;  %v1134_v17 = vld [vmem:[#allocation2 + $0x9c] ss:$24 sps:$4 sm:$0xff]  }
  0x36   :  { %465 = vmatpush1.bf16.msra.mxu0 %v1118_v6  ;;  %v1132_v16 = vld [vmem:[#allocation2 + $0x94] ss:$24 sps:$4 sm:$0xff]   ;;  %v1136_v18 = vld [vmem:[#allocation2 + $0x90] ss:$24 sps:$4 sm:$0xff]   ;;  %v1326_v21 = vmov 1966171168  }
  0x37   :  { %506 = vmatpush1.bf16.msra.mxu1 %v1119_v7  ;;  %466 = vmatprep.subr.bf16.mxu0 %v1120_v8  ;;  %v1137_v19 = vld [vmem:[#allocation2 + $0x98] ss:$24 sps:$4 sm:$0xff]   ;;  %v174_v22 = vunpack.c.l.s4 %v1326_v21  ;;  %v1138_v23 = vld [vmem:[#allocation2 + $0x64] ss:$24 sps:$4 sm:$0xff]   ;;  %v1381_v26 = vshrl.u32 %v134_v20, 7  ;;  %vm458_vm0 = vcmask 130048  }
  0x38   :  { %507 = vmatprep.subr.bf16.mxu1 %v1122_v9  ;;  %v1140_v24 = vld [vmem:[#allocation2 + $0x6c] ss:$24 sps:$4 sm:$0xff]   ;;  %v1142_v25 = vld [vmem:[#allocation2 + $0x60] ss:$24 sps:$4 sm:$0xff]   ;;  %v1146_v30 = vld [vmem:[#allocation2 + $0x3c] ss:$24 sps:$4 sm:$0xff]  }
  0x39   :  { %v175_v27 = vunpack.c.0.s8 %v174_v22  ;;  %v1143_v28 = vld [vmem:[#allocation2 + $0x68] ss:$24 sps:$4 sm:$0xff]   ;;  %v1144_v29 = vld [vmem:[#allocation2 + $0x34] ss:$24 sps:$4 sm:$0xff]   ;;  %v1149_v32 = vld [vmem:[#allocation2 + $0x38] ss:$24 sps:$4 sm:$0xff]  }
  0x3a   :  { %467 = vmatpush1.bf16.msra.mxu0 %v1124_v10  ;;  %v1148_v31 = vld [vmem:[#allocation2 + $0x30] ss:$24 sps:$4 sm:$0xff]   ;;  %v1006_v34 = vld.sshfl [vmem:[%s1423_s0] sm:$0x11 pattern:$0x75316420] }
  0x3b   :  { %508 = vmatpush1.bf16.msra.mxu1 %v1125_v11  ;;  %468 = vmatprep.subr.bf16.mxu0 %v1126_v12  ;;  %v178_v33 = vsub.s32 %v175_v27, %v1381_v26  ;;  %v1150_v35 = vld [vmem:[#allocation2 + $0x4] ss:$24 sps:$4 sm:$0xff]   ;;  %v172_v37 = vcombine.high %v1006_v34, %v1006_v34  ;;  %v1154_v38 = vld [vmem:[#allocation2] ss:$24 sps:$4 sm:$0xff]   ;;  %v1167_v46 = vld [vmem:[#allocation4 + $0xc4] ss:$24 sps:$4 sm:$0xff]  }
  0x3c   :  { %509 = vmatprep.subr.bf16.mxu1 %v1128_v13  ;;  %v1152_v36 = vld [vmem:[#allocation2 + $0xc] ss:$24 sps:$4 sm:$0xff]   ;;  %v1155_v40 = vld [vmem:[#allocation2 + $0x8] ss:$24 sps:$4 sm:$0xff]   ;;  %v1327_v56 = vmov 0   ;;  %vm833_vm1 = vcmask 654336  }
  0x3d   :  { %v186_v39 = vrot.slane %v172_v37, %v178_v33  ;;  %v1156_v41 = vld [vmem:[#allocation2 + $0x184] ss:$24 sps:$4 sm:$0xff]   ;;  %v1160_v43 = vld [vmem:[#allocation2 + $0x180] ss:$24 sps:$4 sm:$0xff]   ;;  %v1389_v47 = vrot.slane %v1006_v34, %v178_v33  ;;  %v1165_v49 = vld [vmem:[#allocation4 + $0xc0] ss:$24 sps:$4 sm:$0xff]  }
  0x3e   :  { %469 = vmatpush1.bf16.msra.mxu0 %v1130_v14  ;;  %v1158_v42 = vld [vmem:[#allocation2 + $0x18c] ss:$24 sps:$4 sm:$0xff]   ;;  %v1161_v44 = vld [vmem:[#allocation2 + $0x188] ss:$24 sps:$4 sm:$0xff]   ;;  %v1197_v4 = vld [vmem:[#allocation4 + $0xcc] ss:$24 sps:$4 sm:$0xff]  }
  0x3f   :  { %510 = vmatpush1.bf16.msra.mxu1 %v1131_v15  ;;  %470 = vmatprep.subr.bf16.mxu0 %v1132_v16  ;;  %v1164_v45 = vld [vmem:[#allocation2 + $0x164] ss:$24 sps:$4 sm:$0xff]   ;;  %v1162_v48 = vld [vmem:[#allocation2 + $0x160] ss:$24 sps:$4 sm:$0xff]   ;;  %v1170_v50 = vld [vmem:[#allocation2 + $0x134] ss:$24 sps:$4 sm:$0xff]  }
  0x40   :  { %511 = vmatprep.subr.bf16.mxu1 %v1134_v17  ;;  %1061 = vmatprep.mubr.msk.bf16.mxu0 %vm458_vm0, %v186_v39  ;;  %v1173_v51 = vld [vmem:[#allocation4 + $0x94] ss:$24 sps:$4 sm:$0xff]   ;;  %v1168_v52 = vld [vmem:[#allocation2 + $0x130] ss:$24 sps:$4 sm:$0xff]   ;;  %v1171_v53 = vld [vmem:[#allocation4 + $0x90] ss:$24 sps:$4 sm:$0xff]  }
  0x41   :  { %1062 = vmatprep.mubr.msk.bf16.mxu1 %vm458_vm0, %v186_v39  ;;  %v1176_v54 = vld [vmem:[#allocation2 + $0x104] ss:$24 sps:$4 sm:$0xff]   ;;  %v1179_v55 = vld [vmem:[#allocation4 + $0x64] ss:$24 sps:$4 sm:$0xff]   ;;  %v1174_v57 = vld [vmem:[#allocation2 + $0x100] ss:$24 sps:$4 sm:$0xff]  }
  0x42   :  { %471 = vmatpush1.bf16.msra.mxu0 %v1136_v18  ;;  %v1177_v58 = vld [vmem:[#allocation4 + $0x60] ss:$24 sps:$4 sm:$0xff]   ;;  %v1182_v59 = vld [vmem:[#allocation2 + $0xd4] ss:$24 sps:$4 sm:$0xff]   ;;  %v1185_v60 = vld [vmem:[#allocation4 + $0x34] ss:$24 sps:$4 sm:$0xff]  }
  0x43   :  { %512 = vmatpush1.bf16.msra.mxu1 %v1137_v19  ;;  %472 = vmatprep.subr.bf16.mxu0 %v1138_v23  ;;  %v1180_v61 = vld [vmem:[#allocation2 + $0xd0] ss:$24 sps:$4 sm:$0xff]   ;;  %v1183_v62 = vld [vmem:[#allocation4 + $0x30] ss:$24 sps:$4 sm:$0xff]   ;;  %v1188_v63 = vld [vmem:[#allocation2 + $0xa4] ss:$24 sps:$4 sm:$0xff]  }
  0x44   :  { %513 = vmatprep.subr.bf16.mxu1 %v1140_v24  ;;  %v1191_v0 = vld [vmem:[#allocation4 + $0x4] ss:$24 sps:$4 sm:$0xff]   ;;  %v1186_v1 = vld [vmem:[#allocation2 + $0xa0] ss:$24 sps:$4 sm:$0xff]   ;;  %v1189_v2 = vld [vmem:[#allocation4] ss:$24 sps:$4 sm:$0xff]  }
  0x45   :  { %v1194_v3 = vld [vmem:[#allocation2 + $0x74] ss:$24 sps:$4 sm:$0xff]   ;;  %v1192_v5 = vld [vmem:[#allocation2 + $0x70] ss:$24 sps:$4 sm:$0xff]   ;;  %v620_v7 = vld [vmem:[%s1424_s1] sm:$0x1] }
  0x46   :  { %473 = vmatpush1.bf16.msra.mxu0 %v1142_v25  ;;  %v1195_v6 = vld [vmem:[#allocation4 + $0xc8] ss:$24 sps:$4 sm:$0xff]   ;;  %v1200_v8 = vld [vmem:[#allocation2 + $0x44] ss:$24 sps:$4 sm:$0xff]   ;;  %v1201_v11 = vld [vmem:[#allocation4 + $0x98] ss:$24 sps:$4 sm:$0xff]  }
  0x47   :  { %514 = vmatpush1.bf16.msra.mxu1 %v1143_v28  ;;  %474 = vmatprep.subr.bf16.mxu0 %v1144_v29  ;;  %v1203_v9 = vld [vmem:[#allocation4 + $0x9c] ss:$24 sps:$4 sm:$0xff]   ;;  %v1198_v10 = vld [vmem:[#allocation2 + $0x40] ss:$24 sps:$4 sm:$0xff]   ;;  %v1209_v13 = vld [vmem:[#allocation4 + $0x6c] ss:$24 sps:$4 sm:$0xff]  }
  0x48   :  { %515 = vmatprep.subr.bf16.mxu1 %v1146_v30  ;;  %v1206_v12 = vld [vmem:[#allocation2 + $0x14] ss:$24 sps:$4 sm:$0xff]   ;;  %v1204_v14 = vld [vmem:[#allocation2 + $0x10] ss:$24 sps:$4 sm:$0xff]   ;;  %v1221_v21 = vld [vmem:[#allocation4 + $0xd4] ss:$24 sps:$4 sm:$0xff]  }
  0x49   :  { %v1207_v15 = vld [vmem:[#allocation4 + $0x68] ss:$24 sps:$4 sm:$0xff]   ;;  %v1212_v16 = vld [vmem:[#allocation2 + $0x194] ss:$24 sps:$4 sm:$0xff]   ;;  %v1213_v19 = vld [vmem:[#allocation4 + $0x38] ss:$24 sps:$4 sm:$0xff]  }
  0x4a   :  { %475 = vmatpush1.bf16.msra.mxu0 %v1148_v31  ;;  %v1215_v17 = vld [vmem:[#allocation4 + $0x3c] ss:$24 sps:$4 sm:$0xff]   ;;  %v1210_v18 = vld [vmem:[#allocation2 + $0x190] ss:$24 sps:$4 sm:$0xff]   ;;  %v1218_v20 = vld [vmem:[#allocation4 + $0xc] ss:$24 sps:$4 sm:$0xff]  }
  0x4b   :  { %516 = vmatpush1.bf16.msra.mxu1 %v1149_v32  ;;  %476 = vmatprep.subr.bf16.mxu0 %v1150_v35  ;;  %v1216_v22 = vld [vmem:[#allocation4 + $0x8] ss:$24 sps:$4 sm:$0xff]   ;;  %v1224_v24 = vld [vmem:[#allocation4 + $0xa4] ss:$24 sps:$4 sm:$0xff]   ;;  %v1227_v27 = vld [vmem:[#allocation4 + $0x74] ss:$24 sps:$4 sm:$0xff]  }
  0x4c   :  { %517 = vmatprep.subr.bf16.mxu1 %v1152_v36  ;;  %v1219_v23 = vld [vmem:[#allocation4 + $0xd0] ss:$24 sps:$4 sm:$0xff]   ;;  %v1222_v25 = vld [vmem:[#allocation4 + $0xa0] ss:$24 sps:$4 sm:$0xff]   ;;  %v1230_v29 = vld [vmem:[#allocation4 + $0x44] ss:$24 sps:$4 sm:$0xff]  }
  0x4d   :  { %v1225_v28 = vld [vmem:[#allocation4 + $0x70] ss:$24 sps:$4 sm:$0xff]   ;;  %v1228_v30 = vld [vmem:[#allocation4 + $0x40] ss:$24 sps:$4 sm:$0xff]   ;;  %v1233_v31 = vld [vmem:[#allocation4 + $0x14] ss:$24 sps:$4 sm:$0xff]  }
  0x4e   :  { %477 = vmatpush1.bf16.msra.mxu0 %v1154_v38  ;;  %v1231_v32 = vld [vmem:[#allocation4 + $0x10] ss:$24 sps:$4 sm:$0xff]   ;;  %v136_v33 = vsub.s32 0, %v1381_v26  ;;  %v144_v34 = vsub.s32 2, %v1381_v26  ;;  %v140_v36 = vsub.s32 1, %v1381_v26 }
  0x4f   :  { %518 = vmatpush1.bf16.msra.mxu1 %v1155_v40  ;;  %492 = vmatprep.subr.bf16.mxu0 %v1156_v41  ;;  %v132_v35 = vld [vmem:[#allocation6] sm:$0x3f]  ;;  %v1328_v37 = vmov 1983009808  }
  0x50   :  { %533 = vmatprep.subr.bf16.mxu1 %v1158_v42  ;;  %v594_v38 = vunpack.c.l.s4 %v1328_v37  ;;  %v137_v40 = vrot.slane %v132_v35, %v136_v33  ;;  %v145_v41 = vrot.slane %v132_v35, %v144_v34  ;;  %v141_v42 = vrot.slane %v132_v35, %v140_v36 }
  0x52   :  { %493 = vmatpush2.bf16.msra.mxu0 %v1160_v43  ;;  %v595_v43 = vunpack.c.0.s8 %v594_v38 }
  0x53   :  { %534 = vmatpush2.bf16.msra.mxu1 %v1161_v44  ;;  %544 = vmatprep.subr.bf16.mxu0 %v1164_v45 }
  0x54   :  { %843 = vmatprep.subr.bf16.mxu1 %v1167_v46 }
  0x55   :  { %495 = vmatmul.mubr.bf16.vlgmr.msra.gmra.mxu0 %v1389_v47 }
  0x56   :  { %536 = vmatmul.mubr.bf16.vlgmr.msra.gmra.mxu1 %v1389_v47  ;;  %545 = vmatpush1.bf16.msra.mxu0 %v1162_v48 }
  0x57   :  { %844 = vmatpush1.bf16.msra.mxu1 %v1165_v49  ;;  %546 = vmatprep.subr.bf16.mxu0 %v1170_v50 }
  0x58   :  { %845 = vmatprep.subr.bf16.mxu1 %v1173_v51  ;;  %869 = vmatprep.mubr.bf16.mxu1 %v1327_v56 }
  0x59   :  { %1063 = vmatprep.mubr.msk.bf16.mxu0 %vm458_vm0, %v186_v39  ;;  %v148_v39 = vsub.s32 3, %v1381_v26 }
  0x5a   :  { %547 = vmatpush1.bf16.msra.mxu0 %v1168_v52  ;;  %v598_v52 = vsub.s32 %v595_v43, %v1381_v26 }
  0x5b   :  { %846 = vmatpush1.bf16.msra.mxu1 %v1171_v53  ;;  %548 = vmatprep.subr.bf16.mxu0 %v1176_v54  ;;  %v149_v44 = vrot.slane %v132_v35, %v148_v39 }
  0x5c   :  { %847 = vmatprep.subr.bf16.mxu1 %v1179_v55 }
  0x5e   :  { %549 = vmatpush1.bf16.msra.mxu0 %v1174_v57 }
  0x5f   :  { %848 = vmatpush1.bf16.msra.mxu1 %v1177_v58  ;;  %550 = vmatprep.subr.bf16.mxu0 %v1182_v59 }
  0x60   :  { %849 = vmatprep.subr.bf16.mxu1 %v1185_v60 }
  0x62   :  { %551 = vmatpush1.bf16.msra.mxu0 %v1180_v61 }
  0x63   :  { %850 = vmatpush1.bf16.msra.mxu1 %v1183_v62  ;;  %552 = vmatprep.subr.bf16.mxu0 %v1188_v63 }
  0x64   :  { %851 = vmatprep.subr.bf16.mxu1 %v1191_v0 }
  0x66   :  { %553 = vmatpush1.bf16.msra.mxu0 %v1186_v1 }
  0x67   :  { %852 = vmatpush1.bf16.msra.mxu1 %v1189_v2  ;;  %554 = vmatprep.subr.bf16.mxu0 %v1194_v3  ;;  %v152_v3 = vsub.s32 4, %v1381_v26 }
  0x68   :  { %884 = vmatprep.subr.bf16.mxu1 %v1197_v4  ;;  %v156_v4 = vsub.s32 5, %v1381_v26 }
  0x6a   :  { %1095 = vmatmul.mubr.msk.bf16.vlgmr.msra.gmra.mxu1 %vm833_vm1, %v620_v7  ;;  %555 = vmatpush1.bf16.msra.mxu0 %v1192_v5  ;;  %v651_v5 = vld [vmem:[#allocation7] sm:$0x3f] }
  0x6b   :  { %885 = vmatpush1.bf16.msra.mxu1 %v1195_v6  ;;  %556 = vmatprep.subr.bf16.mxu0 %v1200_v8  ;;  %v153_v6 = vrot.slane %v132_v35, %v152_v3  ;;  %v660_v8 = vrot.slane %v651_v5, %v140_v36 }
  0x6c   :  { %886 = vmatprep.subr.bf16.mxu1 %v1203_v9  ;;  %910 = vmatprep.mubr.bf16.mxu1 %v1327_v56  ;;  %v157_v9 = vrot.slane %v132_v35, %v156_v4 }
  0x6e   :  { %557 = vmatpush1.bf16.msra.mxu0 %v1198_v10 }
  0x6f   :  { %887 = vmatpush1.bf16.msra.mxu1 %v1201_v11  ;;  %558 = vmatprep.subr.bf16.mxu0 %v1206_v12  ;;  %v664_v12 = vrot.slane %v651_v5, %v144_v34 }
  0x70   :  { %888 = vmatprep.subr.bf16.mxu1 %v1209_v13 }
  0x72   :  { %559 = vmatpush1.bf16.msra.mxu0 %v1204_v14 }
  0x73   :  { %889 = vmatpush1.bf16.msra.mxu1 %v1207_v15  ;;  %574 = vmatprep.subr.bf16.mxu0 %v1212_v16 }
  0x74   :  { %890 = vmatprep.subr.bf16.mxu1 %v1215_v17  ;;  %v668_v17 = vrot.slane %v651_v5, %v148_v39 }
  0x76   :  { %575 = vmatpush2.bf16.msra.mxu0 %v1210_v18 }
  0x77   :  { %891 = vmatpush1.bf16.msra.mxu1 %v1213_v19  ;;  %925 = vmatprep.subr.bf16.mxu0 %v1221_v21 }
  0x78   :  { %892 = vmatprep.subr.bf16.mxu1 %v1218_v20 }
  0x79   :  { %577 = vmatmul.mubr.bf16.vlgmr.msra.gmra.mxu0 %v1389_v47 }
  0x7a   :  { %926 = vmatpush1.bf16.msra.mxu0 %v1219_v23  ;;  %951 = vmatprep.mubr.bf16.mxu0 %v1327_v56 }
  0x7b   :  { %893 = vmatpush1.bf16.msra.mxu1 %v1216_v22  ;;  %927 = vmatprep.subr.bf16.mxu0 %v1224_v24 }
  0x7e   :  { %1096 = vmatmul.mubr.msk.bf16.vlgmr.msra.gmra.mxu1 %vm833_vm1, %v620_v7  ;;  %928 = vmatpush1.bf16.msra.mxu0 %v1222_v25 }
  0x7f   :  { %929 = vmatprep.subr.bf16.mxu0 %v1227_v27 }
  0x82   :  { %930 = vmatpush1.bf16.msra.mxu0 %v1225_v28 }
  0x83   :  { %931 = vmatprep.subr.bf16.mxu0 %v1230_v29 }
  0x86   :  { %932 = vmatpush1.bf16.msra.mxu0 %v1228_v30 }
  0x87   :  { %933 = vmatprep.subr.bf16.mxu0 %v1233_v31 }
  0x8a   :  { %934 = vmatpush1.bf16.msra.mxu0 %v1231_v32  ;;  %v672_v32 = vrot.slane %v651_v5, %v152_v3 }
  0x8d   :  { %1097 = vmatmul.mubr.msk.bf16.vlgmr.msra.gmra.mxu0 %vm833_vm1, %v620_v7  ;;  %v656_v7 = vrot.slane %v651_v5, %v136_v33  ;;  %v676_v33 = vrot.slane %v651_v5, %v156_v4 }
 0x115   :  { %v496_v45 = vpop.f32.mrf.mxu0 }
 0x116   :  { %v537_v46 = vpop.f32.mrf.mxu1  ;;  %v497_v47 = vadd.f32 %v496_v45, %v137_v40 }
 0x117   :  { %v538_v48 = vadd.f32 %v537_v46, %v145_v41  ;;  %v498_v49 = vpop.f32.mrf.mxu0 }
 0x118   :  { %v539_v50 = vpop.f32.mrf.mxu1  ;;  %v499_v51 = vadd.f32 %v498_v49, %v141_v42 }
 0x119   :  { %v540_v53 = vadd.f32 %v539_v50, %v149_v44  ;;  %v500_v54 = vpop.f32.mrf.mxu0 }
 0x11a   :  { %v541_v55 = vpop.f32.mrf.mxu1  ;;  %v591_v56 = vcombine.low %v497_v47, %v499_v51 }
 0x11b   :  { %v592_v57 = vcombine.low %v538_v48, %v540_v53  ;;  %v501_v58 = vpop.f32.mrf.mxu0 }
 0x11c   :  { %v542_v59 = vpop.f32.mrf.mxu1  ;;  %v599_v60 = vrot.slane %v591_v56, %v598_v52 }
 0x11d   :  { %v606_v61 = vrot.slane %v592_v57, %v598_v52 }
 0x11f   :  { %v607_v62 = vcombine.low %v599_v60, %v606_v61 }
 0x121   :  { %618 = vst [vmem:[%s1429_s6] sm:$0xff] %v607_v62 }
 0x12a   :  { %v871_v63 = vpop.f32.mrf.mxu1 }
 0x12b   :  { %v872_v14 = vadd.f32 %v871_v63, %v656_v7 }
 0x12c   :  { %v873_v0 = vpop.f32.mrf.mxu1 }
 0x12d   :  { %v874_v15 = vadd.f32 %v873_v0, %v660_v8 }
 0x12e   :  { %v875_v1 = vpop.f32.mrf.mxu1 }
 0x12f   :  { %v966_v26 = vcombine.low %v872_v14, %v874_v15 }
 0x130   :  { %v876_v2 = vpop.f32.mrf.mxu1 }
 0x131   :  { %v974_v29 = vrot.slane %v966_v26, %v598_v52 }
 0x139   :  { %v578_v10 = vpop.f32.mrf.mxu0 }
 0x13a   :  { %v579_v11 = vadd.f32 %v578_v10, %v153_v6 }
 0x13b   :  { %v580_v13 = vpop.f32.mrf.mxu0 }
 0x13c   :  { %v581_v16 = vadd.f32 %v580_v13, %v157_v9 }
 0x13d   :  { %v582_v18 = vpop.f32.mrf.mxu0 }
 0x13e   :  { %v912_v19 = vpop.f32.mrf.mxu1  ;;  %v608_v20 = vcombine.low %v579_v11, %v581_v16 }
 0x13f   :  { %v913_v21 = vadd.f32 %v912_v19, %v664_v12  ;;  %v583_v22 = vpop.f32.mrf.mxu0 }
 0x140   :  { %v914_v23 = vpop.f32.mrf.mxu1  ;;  %1064 = vst.sshfl [vmem:[%s1429_s6 + $0x8] sm:$0x33 pattern:$0x76325410] %v608_v20 }
 0x141   :  { %v915_v24 = vadd.f32 %v914_v23, %v668_v17 }
 0x142   :  { %v916_v25 = vpop.f32.mrf.mxu1 }
 0x143   :  { %v967_v27 = vcombine.low %v913_v21, %v915_v24 }
 0x144   :  { %v917_v28 = vpop.f32.mrf.mxu1 }
 0x145   :  { %v981_v30 = vrot.slane %v967_v27, %v598_v52 }
 0x147   :  { %v982_v31 = vcombine.low %v974_v29, %v981_v30 }
 0x149   :  { %993 = vst [vmem:[%s1430_s7] sm:$0xff] %v982_v31 }
 0x14d   :  { %v953_v34 = vpop.f32.mrf.mxu0 }
 0x14e   :  { %v954_v36 = vadd.f32 %v953_v34, %v672_v32 }
 0x14f   :  { %v955_v35 = vpop.f32.mrf.mxu0 }
 0x150   :  { %v956_v37 = vadd.f32 %v955_v35, %v676_v33 }
 0x151   :  { %v957_v38 = vpop.f32.mrf.mxu0 }
 0x152   :  { %v983_v39 = vcombine.low %v954_v36, %v956_v37 }
 0x153   :  { %v958_v40 = vpop.f32.mrf.mxu0 }
 0x154   :  { %1098 = vst.sshfl [vmem:[%s1430_s7 + $0x8] sm:$0x33 pattern:$0x76325410] %v983_v39 }
 0x155   :  { %1003 = vsyncpa [#allocation3], 1 }
 0x156   :  { %1004 = vsyncpa [#allocation5], 1 }
 0x157   :  { %1005 = vsyncpa [#allocation8], 1 }

// kernel: _lambda_.3
= control target key start
LH: loop header
LB: loop body
LE: loop exit
PB: predicated region body
PF: predicated region fallthrough
CT: control target
= control target key end

     0   :  { %s753_s12 = smov 0   ;;  %s755_s13 = smov 0   ;;  %s862_s0 = inlined_call_operand.vmem [shape: f32[2,3,256], index: 0, kind: input, shape index: {}]   ;;  %s863_s1 = inlined_call_operand.vmem [shape: f32[2,3,256], index: 1, kind: input, shape index: {}]   ;;  %s864_s2 = inlined_call_operand.vmem [shape: f32[2,3,9], index: 2, kind: input, shape index: {}]   ;;  %s865_s3 = inlined_call_operand.vmem [shape: f32[2,3,256], index: 3, kind: output, shape index: {}]  }
   0x1   :  { %s757_s14 = smov 0  }
   0x2 LB: > { %s635_s15 = sadd.s32 4294967295, %s722_s14   ;;  %s770_s16 = sadd.s32 1, %s722_s14   ;;  %s722_s14 = sphi %s757_s14, %s870_s14   ;;  %s718_s13 = sphi %s755_s13, %s869_s13   ;;  %s714_s12 = sphi %s753_s12, %s868_s12  }
   0x3   : > { %s17_s17 = ssub.s32 %s722_s14, %s770_s16  ;;  %s20_s18 = sadd.s32 1, %s718_s13 }
   0x4   : > { %p18_p0 = scmp.eq.s32.totalorder %s17_s17, 0  ;;  %p27_p1 = scmp.ne.s32.totalorder %s718_s13, %s714_s12 }
   0x5   : > { %p28_p2 = scmp.eq.s32.totalorder %s722_s14, 0  ;;  %p104_p3 = scmp.eq.s32.totalorder %s635_s15, 1 }
   0x6   : > { %s781_s19 = scalar_select %p18_p0, %s718_s13, %s20_s18  }
   0x7   : > { %p783_p4 = por %p28_p2, %p27_p1  ;;  %p787_p5 = por %p104_p3, %p27_p1 }
   0x8   : > { %p638_p6 = scmp.ge.s32.totalorder %s722_s14, 2 }
   0xa   : > { %129 = sbr.rel (%p638_p6) target bundleno = 25 (0x19), region = 20 }
   0xf   : > { %132 = sbr.rel (!%p783_p4) target bundleno = 20 (0x14), region = 24  ;;  %s134_s22 = sand.u32 (%p783_p4), 1, %s718_s13  }
  0x10   : > { %s640_s23 = sshll.u32 (%p783_p4), %s722_s14, 2  ;;  %s639_s24 = sshll.u32 (%p783_p4), %s134_s22, 3 }
  0x11   : > { %s138_s27 = scalar_lea.vmem (%p783_p4), %s862_s0, %s640_s23  ;;  %s136_s28 = scalar_lea.vmem (%p783_p4), [#allocation2], %s639_s24 }
  0x12   : > { %v155_v0 = vld [vmem:[%s138_s27] sm:$0xf] (%p783_p4)  ;;  %v157_v1 = vld [vmem:[%s138_s27 + $0x8] sm:$0xf] (%p783_p4) }
  0x13   : > { %156 = vst [vmem:[%s136_s28] sm:$0xf] (%p783_p4), %v155_v0  ;;  %158 = vst [vmem:[%s136_s28 + $0x4] sm:$0xf] (%p783_p4), %v157_v1 }
  0x14 PF: > { %186 = sbr.rel (!%p783_p4) target bundleno = 25 (0x19), region = 65  ;;  %s188_s29 = sand.u32 (%p783_p4), 1, %s718_s13  }
  0x15   : > { %s642_s30 = sshll.u32 (%p783_p4), %s722_s14, 2  ;;  %s641_s4 = sshll.u32 (%p783_p4), %s188_s29, 3 }
  0x16   : > { %s192_s7 = scalar_lea.vmem (%p783_p4), %s863_s1, %s642_s30  ;;  %s190_s8 = scalar_lea.vmem (%p783_p4), [#allocation3], %s641_s4 }
  0x17   : > { %v209_v2 = vld [vmem:[%s192_s7] sm:$0xf] (%p783_p4)  ;;  %v211_v3 = vld [vmem:[%s192_s7 + $0x8] sm:$0xf] (%p783_p4) }
  0x18   : > { %210 = vst [vmem:[%s190_s8] sm:$0xf] (%p783_p4), %v209_v2  ;;  %212 = vst [vmem:[%s190_s8 + $0x4] sm:$0xf] (%p783_p4), %v211_v3 }
  0x19 PF: > { %p643_p7 = scmp.ge.s32.totalorder %s722_s14, 1  ;;  %p239_p8 = scmp.lt.s32.totalorder %s722_s14, 3 }
  0x1b   : > { %p240_p9 = pnand %p643_p7, %p239_p8 }
  0x1c   : > { %s246_s18 = sand.u32 (!%p240_p9), 1, %s714_s12  }
  0x1d   : > { %243 = sbr.rel (%p240_p9) target bundleno = 223 (0xdf), region = 106  ;;  %s817_s20 = sshll.u32 (!%p240_p9), %s246_s18, 3 }
  0x1e   : > { %s248_s22 = scalar_lea.vmem (!%p240_p9), [#allocation2], %s817_s20  ;;  %s255_s12 = scalar_lea.vmem (!%p240_p9), [#allocation3], %s817_s20 }
  0x1f   : > { %s278_s23 = scalar_lea.vmem (!%p240_p9), [#allocation4], %s817_s20 }
  0x22   : > { %v283_v4 = vld [vmem:[%s864_s2] sm:$0x7]  ;;  %v284_v5 = vld [vmem:[%s864_s2 + $0x4] sm:$0x7]  ;;  %v724_v6 = vmov 1   ;;  %v725_v7 = vmov 0   ;;  %v299_v20 = vlaneseq }
  0x23   : > { %686 = vset.pattern.permute.xlu0 %v724_v6  ;;  %687 = vset.pattern.permute.xlu1 %v725_v7  ;;  %v285_v8 = vmul.f32 0.88622695, %v283_v4  ;;  %v286_v9 = vmul.f32 0.88622695, %v284_v5  ;;  %v726_v10 = vmov 2   ;;  %v727_v11 = vmov 3  }
  0x24   : > { %291 = vperm.xlu0 %686, %v283_v4   ;;  %v728_v12 = vmov 5   ;;  %v729_v13 = vmov 4   ;;  %v730_v14 = vmov 6   ;;  %v731_v15 = vmov 8   ;;  %v279_v23 = vld [vmem:[%s248_s22] sm:$0x7] }
  0x25   : > { %311 = vperm.xlu1 %687, %v285_v8   ;;  %v732_v16 = vmov 7   ;;  %v300_v22 = vshrl.u32 %v299_v20, 7  ;;  %v365_v25 = vrot.slane %v279_v23, 1  ;;  %v415_v27 = vmul.f32 3.0, %v279_v23  ;;  %v280_v37 = vld [vmem:[%s248_s22 + $0x4] sm:$0x7] }
  0x26   : > { %v287_v29 = vmul.f32 -1.7724539, %v279_v23  ;;  %v321_v31 = vmul.f32 1.7724539, %v279_v23  ;;  %v471_v39 = vmul.f32 %v279_v23, %v279_v23  ;;  %v366_v40 = vrot.slane %v280_v37, 1  ;;  %s650_s24 = sshll.u32 (%p787_p5), %s635_s15, 2 }
  0x27   : > { %v820_v28 = vsub.s32 1, %v300_v22  ;;  %v822_v30 = vsub.s32 2, %v300_v22  ;;  %v369_v32 = vmul.f32 %v365_v25, %v279_v23  ;;  %v417_v34 = vmul.f32 %v415_v27, %v279_v23  ;;  %s515_s27 = scalar_lea.vmem (%p787_p5), %s865_s3, %s650_s24 }
  0x28   : > { %296 = vperm.xlu0 %686, %v284_v5   ;;  %v824_v35 = vsub.s32 0, %v300_v22  ;;  %v288_v43 = vmul.f32 -1.7724539, %v280_v37  ;;  %v416_v44 = vmul.f32 3.0, %v280_v37  ;;  %v443_v49 = vrot.slane %v279_v23, 2 }
  0x29   : > { %316 = vperm.xlu1 %687, %v286_v9   ;;  %v302_v36 = vrot.slane %v287_v29, %v820_v28  ;;  %v334_v41 = vrot.slane %v321_v31, %v822_v30  ;;  %v371_v42 = vmul.f32 2.4270325, %v369_v32  ;;  %v647_v45 = vadd.f32 -1.0, %v417_v34 }
  0x2a   : > { %v354_v47 = vrot.slane %v287_v29, %v824_v35  ;;  %v475_v50 = vrot.slane %v471_v39, 1  ;;  %v322_v51 = vmul.f32 1.7724539, %v280_v37  ;;  %v370_v53 = vmul.f32 %v366_v40, %v280_v37 }
  0x2b   : > { %v384_v55 = vrot.slane %v371_v42, %v824_v35  ;;  %v393_v56 = vmul.f32 -2.4270325, %v369_v32  ;;  %v306_v57 = vrot.slane %v288_v43, %v820_v28  ;;  %v418_v58 = vmul.f32 %v416_v44, %v280_v37 }
  0x2c   : > { %688 = vset.pattern.permute.xlu0 %v726_v10  ;;  %v421_v59 = vmul.f32 0.7006239, %v647_v45  ;;  %v447_v62 = vmul.f32 %v443_v49, %v279_v23  ;;  %v479_v63 = vsub.f32 %v471_v39, %v475_v50  ;;  %v338_v0 = vrot.slane %v322_v51, %v822_v30 }
  0x2d   : > { %324 = vperm.xlu0 %688, %v283_v4   ;;  %689 = vset.pattern.permute.xlu1 %v726_v10  ;;  %v372_v2 = vmul.f32 2.4270325, %v370_v53  ;;  %v406_v8 = vrot.slane %v393_v56, %v820_v28  ;;  %v358_v10 = vrot.slane %v288_v43, %v824_v35 }
  0x2e   : > { %328 = vperm.xlu1 %689, %v284_v5  }
  0x31   : > { %691 = vset.pattern.permute.xlu0 %v727_v11 }
  0x32   : > { %348 = vperm.xlu0 %691, %v284_v5   ;;  %690 = vset.pattern.permute.xlu1 %v727_v11  ;;  %v394_v11 = vmul.f32 -2.4270325, %v370_v53  ;;  %v281_v53 = vld [vmem:[%s255_s12] sm:$0x7] }
  0x33   : > { %344 = vperm.xlu1 %690, %v283_v4  }
  0x34   : > { %v410_v31 = vrot.slane %v394_v11, %v820_v28 }
  0x36   : > { %693 = vset.pattern.permute.xlu0 %v728_v12 }
  0x37   : > { %692 = vset.pattern.permute.xlu1 %v729_v13  ;;  %396 = vperm.xlu0 %693, %v283_v4  }
  0x38   : > { %374 = vperm.xlu1 %692, %v283_v4  }
  0x3b   : > { %696 = vset.pattern.permute.xlu0 %v730_v14 }
  0x3c   : > { %378 = vperm.xlu1 %692, %v284_v5   ;;  %428 = vperm.xlu0 %696, %v284_v5  }
  0x40   : > { %694 = vset.pattern.permute.xlu1 %v728_v12  ;;  %698 = vset.pattern.permute.xlu0 %v731_v15  ;;  %v648_v12 = vadd.f32 -1.0, %v418_v58 }
  0x41   : > { %400 = vperm.xlu1 %694, %v284_v5   ;;  %484 = vperm.xlu0 %698, %v283_v4  }
  0x42   : > { %v422_v32 = vmul.f32 0.7006239, %v648_v12 }
  0x45   : > { %695 = vset.pattern.permute.xlu1 %v730_v14  ;;  %v434_v14 = vrot.slane %v421_v59, %v822_v30 }
  0x46   : > { %424 = vperm.xlu1 %695, %v283_v4  }
  0x4a   : > { %697 = vset.pattern.permute.xlu1 %v732_v16  ;;  %v481_v16 = vmul.f32 1.2135162, %v479_v63 }
  0x4b   : > { %452 = vperm.xlu1 %697, %v283_v4   ;;  %v444_v4 = vrot.slane %v280_v37, 2 }
  0x4d   : > { %v448_v22 = vmul.f32 %v444_v4, %v280_v37 }
  0x4f   : > { %456 = vperm.xlu1 %697, %v284_v5   ;;  %v450_v40 = vmul.f32 -2.4270325, %v448_v22 }
  0x51   : > { %v466_v49 = vrot.slane %v450_v40, %v824_v35 }
  0x53   : > { %699 = vset.pattern.permute.xlu1 %v731_v15  ;;  %v449_v15 = vmul.f32 -2.4270325, %v447_v62  ;;  %v282_v62 = vld [vmem:[%s255_s12 + $0x4] sm:$0x7] }
  0x54   : > { %488 = vperm.xlu1 %699, %v284_v5   ;;  %v472_v5 = vmul.f32 %v280_v37, %v280_v37 }
  0x55   : > { %v462_v34 = vrot.slane %v449_v15, %v824_v35 }
  0x56   : > { %v476_v23 = vrot.slane %v472_v5, 1 }
  0x58   : > { %v480_v37 = vsub.f32 %v472_v5, %v476_v23 }
  0x5a   : > { %v482_v50 = vmul.f32 1.2135162, %v480_v37 }
  0x9f   : > { %v292_v19 = vpop.permute.xlu0 %291 }
  0xa0   : > { %v312_v17 = vpop.permute.xlu1 %311  ;;  %v307_v46 = vmul.f32 %v302_v36, %v292_v19  ;;  %v388_v19 = vrot.slane %v372_v2, %v824_v35  ;;  %v494_v36 = vrot.slane %v481_v16, %v824_v35 }
  0xa2   : > { %v319_v60 = vadd.f32 %v312_v17, %v307_v46 }
  0xa3   : > { %v297_v24 = vpop.permute.xlu0 %296 }
  0xa4   : > { %v815_v18 = vpop.permute.xlu1 %316  ;;  %v308_v9 = vmul.f32 %v306_v57, %v297_v24  ;;  %v498_v57 = vrot.slane %v482_v50, %v824_v35 }
  0xa6   : > { %v320_v24 = vadd.f32 %v815_v18, %v308_v9  ;;  %v438_v18 = vrot.slane %v422_v32, %v822_v30 }
  0xa8   : > { %v325_v33 = vpop.permute.xlu0 %324 }
  0xa9   : > { %v329_v21 = vpop.permute.xlu1 %328  ;;  %v339_v54 = vmul.f32 %v334_v41, %v325_v33 }
  0xaa   : > { %v340_v17 = vmul.f32 %v338_v0, %v329_v21 }
  0xab   : > { %v341_v6 = vadd.f32 %v339_v54, %v319_v60 }
  0xac   : > { %v342_v21 = vadd.f32 %v340_v17, %v320_v24 }
  0xad   : > { %v349_v52 = vpop.permute.xlu0 %348 }
  0xae   : > { %v345_v26 = vpop.permute.xlu1 %344  ;;  %v360_v29 = vmul.f32 %v358_v10, %v349_v52 }
  0xaf   : > { %v359_v61 = vmul.f32 %v354_v47, %v345_v26 }
  0xb0   : > { %v362_v42 = vadd.f32 %v360_v29, %v342_v21 }
  0xb1   : > { %v361_v13 = vadd.f32 %v359_v61, %v341_v6 }
  0xb2   : > { %v397_v1 = vpop.permute.xlu0 %396 }
  0xb3   : > { %v375_v38 = vpop.permute.xlu1 %374  ;;  %v411_v26 = vmul.f32 %v406_v8, %v397_v1 }
  0xb4   : > { %v389_v7 = vmul.f32 %v384_v55, %v375_v38 }
  0xb6   : > { %v391_v25 = vadd.f32 %v389_v7, %v361_v13 }
  0xb7   : > { %v379_v48 = vpop.permute.xlu1 %378  ;;  %v429_v20 = vpop.permute.xlu0 %428 }
  0xb8   : > { %v390_v38 = vmul.f32 %v388_v19, %v379_v48  ;;  %v413_v41 = vadd.f32 %v411_v26, %v391_v25  ;;  %v440_v52 = vmul.f32 %v438_v18, %v429_v20 }
  0xba   : > { %v392_v47 = vadd.f32 %v390_v38, %v362_v42 }
  0xbc   : > { %v401_v3 = vpop.permute.xlu1 %400  ;;  %v485_v39 = vpop.permute.xlu0 %484 }
  0xbd   : > { %v412_v43 = vmul.f32 %v410_v31, %v401_v3  ;;  %v499_v46 = vmul.f32 %v494_v36, %v485_v39 }
  0xbf   : > { %v414_v48 = vadd.f32 %v412_v43, %v392_v47 }
  0xc1   : > { %v425_v27 = vpop.permute.xlu1 %424  ;;  %v442_v58 = vadd.f32 %v440_v52, %v414_v48 }
  0xc2   : > { %v439_v33 = vmul.f32 %v434_v14, %v425_v27 }
  0xc4   : > { %v441_v45 = vadd.f32 %v439_v33, %v413_v41 }
  0xc6   : > { %v453_v44 = vpop.permute.xlu1 %452 }
  0xc7   : > { %v467_v28 = vmul.f32 %v462_v34, %v453_v44 }
  0xc9   : > { %v469_v51 = vadd.f32 %v467_v28, %v441_v45 }
  0xca   : > { %v457_v54 = vpop.permute.xlu1 %456 }
  0xcb   : > { %v501_v55 = vadd.f32 %v499_v46, %v469_v51  ;;  %v468_v56 = vmul.f32 %v466_v49, %v457_v54 }
  0xcd   : > { %v503_v30 = vmul.f32 %v501_v55, %v281_v53  ;;  %v470_v60 = vadd.f32 %v468_v56, %v442_v58 }
  0xcf   : > { %505 = vst [vmem:[%s278_s23] sm:$0x7] %v503_v30  ;;  %v489_v59 = vpop.permute.xlu1 %488 }
  0xd0   : > { %v500_v61 = vmul.f32 %v498_v57, %v489_v59 }
  0xd2   : > { %v502_v63 = vadd.f32 %v500_v61, %v470_v60  ;;  %513 = sbr.rel (!%p787_p5) target bundleno = 223 (0xdf), region = 118 }
  0xd4   : > { %v504_v0 = vmul.f32 %v502_v63, %v282_v62 }
  0xd6   : > { %506 = vst [vmem:[%s278_s23 + $0x4] sm:$0x7] %v504_v0  ;;  %v532_v1 = vld [vmem:[%s278_s23] sm:$0xf] (%p787_p5) }
  0xd7   : > { %533 = vst [vmem:[%s515_s27] sm:$0xf] %v532_v1 }
  0xdd   : > { %v534_v2 = vld [vmem:[%s278_s23 + $0x4] sm:$0xf] }
  0xde   : > { %535 = vst [vmem:[%s515_s27 + $0x8] sm:$0xf] %v534_v2 }
  0xdf PF: > { %p10_p10 = scmp.ge.s32.totalorder %s770_s16, 4   ;;  %s868_s12 = smov %s718_s13 }
  0xe0   : > { %s869_s13 = smov %s781_s19  ;;  %s870_s14 = smov %s770_s16 }
  0xe1   :  { %12 = sbr.rel (!%p10_p10) target bundleno = 2 (0x2), region = 198 }

// kernel: mul.27
= control target key start
LH: loop header
LB: loop body
LE: loop exit
PB: predicated region body
PF: predicated region fallthrough
CT: control target
= control target key end

     0   :  { %2 = vsyncpa [#allocation1], 0  ;;  %s57_s0 = inlined_call_operand.vmem [shape: f32[3], index: 0, kind: input, shape index: {}]   ;;  %s58_s1 = inlined_call_operand.hbm [shape: f32[2,3], index: 1, kind: output, shape index: {}]  }
   0x1   :  { %v5_v0 = vld [vmem:[%s57_s0] ss:$0 sm:$0xff]  ;;  %s40_s0 = smov [#allocation0]  }
   0x2   :  { %6 = vst [vmem:[#allocation0] sm:$0x3] %v5_v0  ;;  %s11_s8 = sshll.u32 %s40_s0, 4  ;;  %s12_s8 = int_to_ptr.vmem [resolvable:$true] %s11_s8 }
   0x3   :  { %s18_s9 = scalar_lea.vmem %s12_s8, 32  ;;  %p23_p1 = scmp.lt.s32.totalorder %s12_s8, %s12_s8 }
   0x4   :  { %p19_p0 = scmp.ne.s32.totalorder %s12_s8, %s18_s9  ;;  %p24_p2 = scmp.lt.s32.totalorder %s18_s9, %s18_s9 }
   0x6   :  { %p25_p3 = por %p24_p2, %p23_p1 }
   0x8   :  { %p26_p4 = pnand %p25_p3, %p19_p0 }
   0xa   :  { %29 = shalt.err (!%p26_p4)
}
   0xb   :  { %14 = dma.vmem_to_hbm [thread:$0]  %s12_s8, 32, %s58_s1, [#allocation1]  }
   0xc   :  { %38 = dma.done.wait [#allocation1], 32  }
   0xd   :  { %39 = vsyncadd [#allocation1], 4294967264 }
   0xe   :  { %16 = vsyncpa [#allocation1], 1 }

</bundles_post_ra>
